<compile_context>
chip_gen: v7x
topology: tpu7x:2x2x1
jax: 0.10.0
libtpu: 0.0.40
codegen_flags: <defaults>
</compile_context>

<pallas_src>
import jax
import jax.numpy as jnp
from jax.experimental import pallas as pl
from jax.experimental.pallas import tpu as pltpu


# ----------------------------------------------------------------------------
# Kernel
# ----------------------------------------------------------------------------
def _mlp_body(x, w1, b1, w2, b2):
    """linear1 -> sigmoid -> linear2 -> softmax(axis=-1), f32 accumulate/elementwise."""
    # linear1 (MXU, f32 accumulate) + bias (f32)
    h = jnp.dot(x, w1, preferred_element_type=jnp.float32) + b1
    # sigmoid via EUP tanh (exact identity, no VPU divide): sigmoid(z) = 0.5*tanh(0.5*z)+0.5
    h = 0.5 * jnp.tanh(0.5 * h) + 0.5
    # linear2 (MXU) + bias; cast h to the weight dtype so bf16 inputs stay on
    # the bf16 MXU path (no-op when everything is f32)
    logits = jnp.dot(h.astype(w2.dtype), w2, preferred_element_type=jnp.float32) + b2
    # numerically stable softmax over last dim; EXACT normalization so rows sum to 1
    m = jnp.max(logits, axis=-1, keepdims=True)
    e = jnp.exp(logits - m)
    return e / jnp.sum(e, axis=-1, keepdims=True)


def mlp_kernel(x_ref, w1_ref, b1_ref, w2_ref, b2_ref, o_ref):
    o_ref[...] = _mlp_body(
        x_ref[...], w1_ref[...], b1_ref[...], w2_ref[...], b2_ref[...]
    ).astype(o_ref.dtype)


# ----------------------------------------------------------------------------
# pallas_call wrappers
# ----------------------------------------------------------------------------
def _forward_gridless(x, w1, b1, w2, b2):
    """Whole problem resident in VMEM, single invocation, no grid/pipeline overhead."""
    B = x.shape[0]
    O = w2.shape[1]
    vmem_spec = pl.BlockSpec(memory_space=pltpu.MemorySpace.VMEM)
    return pl.pallas_call(
        mlp_kernel,
        out_shape=jax.ShapeDtypeStruct((B, O), jnp.float32),
        in_specs=[vmem_spec] * 5,
        out_specs=vmem_spec,
    )(x, w1, b1, w2, b2)


def _forward_tiled(x, w1, b1, w2, b2, tb):
    """Batch-tiled path: grid over batch rows; weights/biases stay resident.

    The batch axis is marked "parallel" so grid steps shard across TensorCores
    on megacore parts (v7x). The last block may be padded when B % tb != 0;
    this is safe because every row is computed independently (row-wise softmax)
    and padded output rows are discarded by the block writeback.
    """
    B, In = x.shape
    H = w1.shape[1]
    O = w2.shape[1]
    grid = (pl.cdiv(B, tb),)
    return pl.pallas_call(
        mlp_kernel,
        out_shape=jax.ShapeDtypeStruct((B, O), jnp.float32),
        grid=grid,
        in_specs=[
            pl.BlockSpec((tb, In), lambda i: (i, 0)),   # activations: tiled over batch
            pl.BlockSpec((In, H), lambda i: (0, 0)),    # weights/biases: constant block
            pl.BlockSpec((1, H), lambda i: (0, 0)),     #   index -> stay resident in
            pl.BlockSpec((H, O), lambda i: (0, 0)),     #   VMEM across grid steps
            pl.BlockSpec((1, O), lambda i: (0, 0)),
        ],
        out_specs=pl.BlockSpec((tb, O), lambda i: (i, 0)),
        compiler_params=pltpu.CompilerParams(
            dimension_semantics=("parallel",),
        ),
    )(x, w1, b1, w2, b2)


# ----------------------------------------------------------------------------
# Dispatch: VMEM-byte accounting + core-count aware tiling
# ----------------------------------------------------------------------------
def _round_up(n, m):
    return ((n + m - 1) // m) * m


def _detect_num_cores():
    """TensorCores per device (2 on v7x-style megacore parts); default 1."""
    try:
        dev = jax.devices()[0]
        return max(1, int(getattr(dev, "num_cores", 1) or 1))
    except Exception:
        return 1


def _bytes_gridless(B, In, H, O, in_itemsize):
    # Everything resident at once: x, output, weights/biases, plus f32
    # intermediates (h and logits/exp), with a 2x factor on intermediates.
    acts = B * In * in_itemsize + B * O * 4 + 2 * B * (H + O) * 4
    weights = (In * H + H * O) * in_itemsize + (H + O) * 4
    return acts + weights


def _choose_batch_tile(B, In, H, O, in_itemsize, num_steps_min, budget):
    # Per-row VMEM cost per grid step: double-buffered input & output tiles
    # plus f32 intermediates; weights/biases are resident (constant index map).
    per_row = 2 * In * in_itemsize + 2 * O * 4 + 2 * (H + O) * 4
    weights = (In * H + H * O) * in_itemsize + (H + O) * 4
    tb_budget = max(8, ((budget - weights) // per_row) // 8 * 8)
    tb_split = _round_up(pl.cdiv(B, max(1, num_steps_min)), 8)
    return max(8, min(tb_budget, tb_split))


def baseline_forward(x, w1, b1, w2, b2, *, use_bf16_inputs=False, num_cores=None,
                     vmem_budget_bytes=12 * 1024 * 1024):
    """Forward pass of `baseline`: softmax(sigmoid(x @ W1 + b1) @ W2 + b2, axis=1).

    use_bf16_inputs: cast x/W1/W2 to bf16 at the kernel boundary (halves HBM
    read traffic); accumulation and elementwise math remain f32.
    """
    B, In = x.shape
    H = w1.shape[1]
    O = w2.shape[1]

    if use_bf16_inputs:
        x = x.astype(jnp.bfloat16)
        w1 = w1.astype(jnp.bfloat16)
        w2 = w2.astype(jnp.bfloat16)
    in_itemsize = x.dtype.itemsize

    if num_cores is None:
        num_cores = _detect_num_cores()

    fits_gridless = _bytes_gridless(B, In, H, O, in_itemsize) <= vmem_budget_bytes

    # Gridless whenever the whole problem is VMEM-resident and there is either a
    # single TensorCore or too little batch to amortize a second grid step.
    if fits_gridless and (num_cores <= 1 or B < 16 * num_cores):
        return _forward_gridless(x, w1, b1, w2, b2)

    tb = _choose_batch_tile(B, In, H, O, in_itemsize, num_cores, vmem_budget_bytes)
    if tb >= B and num_cores <= 1:
        return _forward_gridless(x, w1, b1, w2, b2)
    # Multi-core: grid has (ideally) exactly one step per core, each a large
    # batch tile; single-core overflow: as few, as large, steps as fit the budget.
    return _forward_tiled(x, w1, b1, w2, b2, tb)


# ----------------------------------------------------------------------------
# Params / reference
# ----------------------------------------------------------------------------
def init_params(key, input_size, hidden_size, output_size):
    # Deterministic init mimicking nn.Linear default: U(-1/sqrt(fan_in), +1/sqrt(fan_in))
    k1, k2, k3, k4 = jax.random.split(key, 4)
    bound1 = 1.0 / jnp.sqrt(input_size)
    bound2 = 1.0 / jnp.sqrt(hidden_size)
    w1 = jax.random.uniform(k1, (input_size, hidden_size), jnp.float32, -bound1, bound1)
    b1 = jax.random.uniform(k2, (1, hidden_size), jnp.float32, -bound1, bound1)
    w2 = jax.random.uniform(k3, (hidden_size, output_size), jnp.float32, -bound2, bound2)
    b2 = jax.random.uniform(k4, (1, output_size), jnp.float32, -bound2, bound2)
    return w1, b1, w2, b2


def _reference(x, w1, b1, w2, b2):
    h = jax.nn.sigmoid(x @ w1 + b1)
    return jax.nn.softmax(h @ w2 + b2, axis=1)


if __name__ == "__main__":
    input_size, hidden_size, output_size = 32, 32, 16
    key = jax.random.PRNGKey(0)
    kx1, kx2, kx3, kp = jax.random.split(key, 4)
    w1, b1, w2, b2 = init_params(kp, input_size, hidden_size, output_size)

    # --- 1) small batch -> gridless (launch-overhead-minimal) path ---
    batch_small = 8
    x_small = jax.random.normal(kx1, (batch_small, input_size), jnp.float32)
    out_small = jax.block_until_ready(baseline_forward(x_small, w1, b1, w2, b2))
    ref_small = _reference(x_small, w1, b1, w2, b2)
    assert out_small.shape == (batch_small, output_size)
    assert jnp.allclose(out_small, ref_small, atol=1e-3, rtol=1e-3)
    assert jnp.allclose(jnp.sum(out_small, axis=1), 1.0, atol=1e-3)

    # --- 2) forced two-step parallel grid (v7x-style per-core split) ---
    batch_mid = 64
    x_mid = jax.random.normal(kx2, (batch_mid, input_size), jnp.float32)
    out_mid = jax.block_until_ready(
        baseline_forward(x_mid, w1, b1, w2, b2, num_cores=2)
    )
    ref_mid = _reference(x_mid, w1, b1, w2, b2)
    assert out_mid.shape == (batch_mid, output_size)
    assert jnp.allclose(out_mid, ref_mid, atol=1e-3, rtol=1e-3)
    assert jnp.allclose(jnp.sum(out_mid, axis=1), 1.0, atol=1e-3)

    # --- 3) bf16-input path (halved HBM reads; f32 accumulate/elementwise) ---
    batch_bf = 16
    x_bf = jax.random.normal(kx3, (batch_bf, input_size), jnp.float32)
    out_bf = jax.block_until_ready(
        baseline_forward(x_bf, w1, b1, w2, b2, use_bf16_inputs=True)
    )
    ref_bf = _reference(x_bf, w1, b1, w2, b2)
    assert out_bf.shape == (batch_bf, output_size)
    assert jnp.allclose(out_bf, ref_bf, atol=2e-2, rtol=2e-2)   # bf16 operand rounding
    assert jnp.allclose(jnp.sum(out_bf, axis=1), 1.0, atol=1e-3)  # exact f32 normalization

    print("KERNEL_OK")
</pallas_src>

<mosaic_0001>
module attributes {stable_mosaic.version = 11 : i64} {
  func.func @mlp_kernel(%arg0: memref<8x32xf32, #tpu.memory_space<vmem>>, %arg1: memref<32x32xf32, #tpu.memory_space<vmem>>, %arg2: memref<1x32xf32, #tpu.memory_space<vmem>>, %arg3: memref<32x16xf32, #tpu.memory_space<vmem>>, %arg4: memref<1x16xf32, #tpu.memory_space<vmem>>, %arg5: memref<8x16xf32, #tpu.memory_space<vmem>>) attributes {dimension_semantics = [], scalar_prefetch = 0 : i64, scratch_operands = 0 : i64, tpu.core_type = #tpu.core_type<tc>} {
    %c0 = arith.constant 0 : index
    %c0_0 = arith.constant 0 : index
    %0 = vector.load %arg0[%c0, %c0_0] : memref<8x32xf32, #tpu.memory_space<vmem>>, vector<8x32xf32>
    %c0_1 = arith.constant 0 : index
    %c0_2 = arith.constant 0 : index
    %1 = vector.load %arg1[%c0_1, %c0_2] : memref<32x32xf32, #tpu.memory_space<vmem>>, vector<32x32xf32>
    %c0_3 = arith.constant 0 : index
    %c0_4 = arith.constant 0 : index
    %2 = vector.load %arg2[%c0_3, %c0_4] : memref<1x32xf32, #tpu.memory_space<vmem>>, vector<1x32xf32>
    %c0_5 = arith.constant 0 : index
    %c0_6 = arith.constant 0 : index
    %3 = vector.load %arg3[%c0_5, %c0_6] : memref<32x16xf32, #tpu.memory_space<vmem>>, vector<32x16xf32>
    %c0_7 = arith.constant 0 : index
    %c0_8 = arith.constant 0 : index
    %4 = vector.load %arg4[%c0_7, %c0_8] : memref<1x16xf32, #tpu.memory_space<vmem>>, vector<1x16xf32>
    %cst = arith.constant dense<0.000000e+00> : vector<8x32xf32>
    %5 = tpu.matmul %0, %1, %cst {dimension_numbers = #tpu.dot_dimension_numbers<[1], [0], [0], [1], [0, 0, 1, 1], [], []>} : vector<8x32xf32>, vector<32x32xf32>, vector<8x32xf32> -> vector<8x32xf32>
    %6 = vector.broadcast %2 : vector<1x32xf32> to vector<8x32xf32>
    %7 = arith.addf %5, %6 : vector<8x32xf32>
    %cst_9 = arith.constant 5.000000e-01 : f32
    %8 = vector.broadcast %cst_9 : f32 to vector<8x32xf32>
    %9 = arith.mulf %8, %7 : vector<8x32xf32>
    %10 = math.tanh %9 : vector<8x32xf32>
    %cst_10 = arith.constant 5.000000e-01 : f32
    %11 = vector.broadcast %cst_10 : f32 to vector<8x32xf32>
    %12 = arith.mulf %11, %10 : vector<8x32xf32>
    %cst_11 = arith.constant 5.000000e-01 : f32
    %13 = vector.broadcast %cst_11 : f32 to vector<8x32xf32>
    %14 = arith.addf %12, %13 : vector<8x32xf32>
    %cst_12 = arith.constant dense<0.000000e+00> : vector<8x16xf32>
    %15 = tpu.matmul %14, %3, %cst_12 {dimension_numbers = #tpu.dot_dimension_numbers<[1], [0], [0], [1], [0, 0, 1, 1], [], []>} : vector<8x32xf32>, vector<32x16xf32>, vector<8x16xf32> -> vector<8x16xf32>
    %16 = vector.broadcast %4 : vector<1x16xf32> to vector<8x16xf32>
    %17 = arith.addf %15, %16 : vector<8x16xf32>
    %cst_13 = arith.constant dense<0xFF800000> : vector<8xf32>
    %18 = vector.multi_reduction <maximumf>, %17, %cst_13 [1] : vector<8x16xf32> to vector<8xf32>
    %19 = vector.shape_cast %18 : vector<8xf32> to vector<8x1xf32>
    %20 = vector.broadcast %19 : vector<8x1xf32> to vector<8x16xf32>
    %21 = arith.subf %17, %20 : vector<8x16xf32>
    %22 = math.exp %21 : vector<8x16xf32>
    %cst_14 = arith.constant dense<0.000000e+00> : vector<8xf32>
    %23 = vector.multi_reduction <add>, %22, %cst_14 [1] : vector<8x16xf32> to vector<8xf32>
    %24 = vector.shape_cast %23 : vector<8xf32> to vector<8x1xf32>
    %25 = vector.broadcast %24 : vector<8x1xf32> to vector<8x16xf32>
    %26 = arith.divf %22, %25 : vector<8x16xf32>
    %c0_15 = arith.constant 0 : index
    %c0_16 = arith.constant 0 : index
    %27 = vector.load %arg5[%c0_15, %c0_16] : memref<8x16xf32, #tpu.memory_space<vmem>>, vector<8x16xf32>
    tpu.vector_store %arg5[%c0_15, %c0_16], %26 {strides = array<i32>} : memref<8x16xf32, #tpu.memory_space<vmem>>, vector<8x16xf32>,
    return
  }
}

</mosaic_0001>

<bundles_post_ra>
// kernel: tpu_custom_call.1
= control target key start
LH: loop header
LB: loop body
LE: loop exit
PB: predicated region body
PF: predicated region fallthrough
CT: control target
= control target key end

     0   :  { %v304_v3 = vmov 0.0|0.0   ;;  %vm305_vm0 = vmmov 0   ;;  %v306_v6 = vmov 0.0   ;;  %s388_s0 = inlined_call_operand.vmem [shape: f32[8,32], index: 0, kind: input, shape index: {}]   ;;  %s389_s1 = inlined_call_operand.vmem [shape: f32[32,32], index: 1, kind: input, shape index: {}]   ;;  %s390_s2 = inlined_call_operand.vmem [shape: f32[1,32], index: 2, kind: input, shape index: {}]   ;;  %s391_s3 = inlined_call_operand.vmem [shape: f32[32,16], index: 3, kind: input, shape index: {}]   ;;  %s392_s4 = inlined_call_operand.vmem [shape: f32[1,16], index: 4, kind: input, shape index: {}]   ;;  %s393_s5 = inlined_call_operand.hbm [shape: f32[8,16], index: 5, kind: output, shape index: {}]  }
   0x1   :  { %v22_v0 = vld [vmem:[%s389_s1] sm:$0xff]  ;;  %v23_v1 = vld [vmem:[%s389_s1 + $0x8] sm:$0xff]  ;;  %v24_v2 = vld [vmem:[%s389_s1 + $0x10] sm:$0xff]  ;;  %258 = vmatprep.subr.bf16.mxu0 %v304_v3  ;;  %244 = vmatprep.mubr.msk.f32.mxu0 %vm305_vm0, %v306_v6 }
   0x2   :  { %v259_v4 = vpack.c.bf16 %v23_v1, %v22_v0  ;;  %v25_v5 = vld [vmem:[%s389_s1 + $0x18] sm:$0xff]  ;;  %264 = vmatprep.subr.bf16.mxu1 %v304_v3  ;;  %255 = vmatprep.mubr.msk.f32.mxu1 %vm305_vm0, %v306_v6 }
   0x3   :  { %10 = vsyncpa [#allocation3], 0  ;;  %v262_v7 = vpack.c.bf16 %v25_v5, %v24_v2  ;;  %v21_v8 = vld [vmem:[%s388_s0] sm:$0xff]  ;;  %vm38_vm1 = vcmask 261120   ;;  %v28_v10 = vld [vmem:[%s391_s3 + $0x8] sm:$0xff]  ;;  %vm195_vm2 = vcmask 130048  }
   0x4   :  { %260 = vmatpush3.bf16.msra.mxu0 %v259_v4  ;;  %v27_v9 = vld [vmem:[%s391_s3] sm:$0xff]  ;;  %v29_v12 = vld [vmem:[%s391_s3 + $0x10] sm:$0xff]  ;;  %v30_v13 = vld [vmem:[%s391_s3 + $0x18] sm:$0xff] }
   0x5   :  { %261 = vmatprep.subr.bf16.mxu0 %v304_v3  ;;  %v265_v11 = vpack.c.bf16 %v28_v10, %v27_v9  ;;  %v268_v14 = vpack.c.bf16 %v30_v13, %v29_v12  ;;  %v222_v15 = vld [vmem:[%s390_s2] ss:$0 sm:$0xff]  ;;  %s307_s2 = smov [#allocation2]  }
   0x6   :  { %v224_v23 = vld [vmem:[%s392_s4] ss:$0 sm:$0xff]  ;;  %s214_s3 = sshll.u32 %s307_s2, 4  ;;  %s215_s3 = int_to_ptr.vmem [resolvable:$true] %s214_s3 }
   0x7   :  { %266 = vmatpush3.bf16.msra.mxu1 %v265_v11  ;;  %s280_s4 = scalar_lea.vmem %s215_s3, 128  ;;  %p285_p1 = scmp.lt.s32.totalorder %s215_s3, %s215_s3 }
   0x8   :  { %263 = vmatpush3.bf16.msra.mxu0 %v262_v7  ;;  %267 = vmatprep.subr.bf16.mxu1 %v304_v3  ;;  %p281_p0 = scmp.ne.s32.totalorder %s215_s3, %s280_s4  ;;  %p286_p2 = scmp.lt.s32.totalorder %s280_s4, %s280_s4 }
   0xa   :  { %p287_p3 = por %p286_p2, %p285_p1 }
   0xb   :  { %245 = vmatmul.mubr.msk.f32.vlgmr.msra.gmra.mrb[0].mxu0 %vm38_vm1, %v21_v8  ;;  %269 = vmatpush3.bf16.msra.mxu1 %v268_v14 }
   0xc   :  { %p288_p4 = pnand %p287_p3, %p281_p0 }
  0xde   :  { %v108_v16 = vpop.f32.mrb[0].mxu0 }
  0xdf   :  { %v109_v17 = vadd.f32 %v222_v15, %v108_v16  ;;  %v246_v18 = vpop.f32.mrb[1].mxu0 }
  0xe1   :  { %v112_v19 = vmul.f32 0.5, %v109_v17 }
  0xe3   :  { %274 = vtanh.f32 %v112_v19 }
  0xed   :  { %v275_v20 = vpop.eup %274 }
  0xee   :  { %v114_v21 = vmul.f32 0.5, %v275_v20 }
  0xf0   :  { %v115_v22 = vadd.f32 0.5, %v114_v21 }
  0xf2   :  { %256 = vmatmul.mubr.msk.f32.vlgmr.msra.gmra.mrb[0].mxu1 %vm38_vm1, %v115_v22 }
 0x1c5   :  { %v191_v24 = vpop.f32.mrb[0].mxu1 }
 0x1c6   :  { %v192_v25 = vadd.f32 %v224_v23, %v191_v24  ;;  %v257_v26 = vpop.f32.mrb[1].mxu1 }
 0x1c8   :  { %v196_v27 = vsel %vm195_vm2, %v192_v25, -inf }
 0x1c9   :  { %197 = vmax.xlane.f32.xlu0 %v196_v27 }
 0x256   :  { %v198_v28 = vpop.xlane.xlu0 %197 }
 0x257   :  { %v199_v29 = vsub.f32 %v192_v25, %v198_v28 }
 0x259   :  { %v200_v30 = vmul.f32 1.442695, %v199_v29 }
 0x25b   :  { %276 = vpow2.f32 %v200_v30 }
 0x265   :  { %v277_v31 = vpop.eup %276 }
 0x266   :  { %v202_v32 = vsel %vm195_vm2, %v277_v31, 0.0 }
 0x267   :  { %203 = vadd.xlane.f32.xlu0 %v202_v32 }
 0x2f4   :  { %v204_v33 = vpop.xlane.xlu0 %203 }
 0x2f5   :  { %278 = vrcp.f32 %v204_v33 }
 0x2ff   :  { %v279_v34 = vpop.eup %278 }
 0x300   :  { %v206_v35 = vmul.f32 %v279_v34, %v277_v31 }
 0x302   :  { %207 = vst.msk [vmem:[#allocation2] sm:$0xff] %vm195_vm2, %v206_v35 }
 0x303   :  { %291 = shalt.err (!%p288_p4)
}
 0x304   :  { %s292_s15 = scalar_lea.hbm %s393_s5, 128 }
 0x305   :  { %p293_p5 = scmp.ne.s32.totalorder %s393_s5, %s292_s15  ;;  %p296_p6 = scmp.lt.u32.totalorder %s292_s15, %s393_s5 }
 0x307   :  { %p298_p7 = pnand %p296_p6, %p293_p5 }
 0x309   :  { %301 = shalt.err (!%p298_p7)
}
 0x30a   :  { %217 = dma.vmem_to_hbm [thread:$0]  %s215_s3, 128, %s393_s5, [#allocation3]  }
 0x30b   :  { %302 = dma.done.wait [#allocation3], 128  }
 0x30c   :  { %303 = vsyncadd [#allocation3], 4294967168 }
 0x30d   :  { %221 = vsyncpa [#allocation3], 1 }

</bundles_post_ra>
